<compile_context>
chip_gen: v7x
topology: tpu7x:2x2x1
jax: 0.10.0
libtpu: 0.0.40
codegen_flags: <defaults>
</compile_context>

<pallas_src>
import jax
import jax.numpy as jnp
from jax.experimental import pallas as pl
from jax.experimental.pallas import tpu as pltpu

BETA = 1.0 / 9.0
RPN_LAMBDA = 10          # kept for parity with the PyTorch module (unused in forward)
LANES = 128


def _round_up(x, m):
    return (x + m - 1) // m * m


def rpn_loss_kernel(cls_ref, reg_ref, treg_ref, tcls_ref, out_ref,
                    cls_acc, reg_acc, cnt_acc):
    step = pl.program_id(1)                               # inner (reduction) axis

    @pl.when(step == 0)
    def _init():
        cls_acc[...] = jnp.zeros_like(cls_acc)
        reg_acc[...] = jnp.zeros_like(reg_acc)
        cnt_acc[...] = jnp.zeros_like(cnt_acc)

    tcls = tcls_ref[...].astype(jnp.int32)                # int8 -> int32 after load
    fg_b = tcls > 0                                       # foreground mask (bool)
    # One mask for both denominators: for RPN labels in {-1, 0, 1},
    # (tcls != -1) == (tcls >= 0).  Padded anchors carry -1 and drop out everywhere.
    valid = (tcls >= 0).astype(jnp.float32)               # [tr, 128]
    fg = fg_b.astype(jnp.float32)                         # [tr, 128]

    # ---- binary cross entropy with ignore_index == -1 (numerator only) ----
    l0 = cls_ref[0].astype(jnp.float32)                   # [tr, 128]
    l1 = cls_ref[1].astype(jnp.float32)                   # [tr, 128]
    lse = jnp.maximum(l0, l1) + jnp.log(1.0 + jnp.exp(-jnp.abs(l0 - l1)))
    picked = jnp.where(fg_b, l1, l0)                      # tcls==-1 -> l0, masked by `valid`
    nll = lse - picked                                    # -log softmax[target]

    # ---- SmoothL1(beta=1/9) on foreground anchors, one channel at a time ----
    sl_anchor = jnp.zeros_like(valid)                     # [tr, 128]
    for ch in range(reg_ref.shape[0]):                    # static 4-way unroll
        d = reg_ref[ch].astype(jnp.float32) - treg_ref[ch].astype(jnp.float32)
        x = jnp.abs(d)
        sl_anchor += jnp.where(x >= BETA, x - 0.5 * BETA, (0.5 / BETA) * x * x)

    # Fold [tr,128] partials into the (8,128) accumulators: pure vreg-wise VALU adds,
    # no XLU, one accumulator load/store per plane per step.
    tr = valid.shape[0]

    def fold(v):
        return jnp.sum(v.reshape(tr // 8, 8, v.shape[1]), axis=0)

    cls_acc[...] += fold(nll * valid)
    reg_acc[...] += fold(sl_anchor * fg)
    cnt_acc[...] += fold(valid)

    @pl.when(step == pl.num_programs(1) - 1)
    def _finalize():
        # Lane-dense per-shard partial sums; cross-lane reduce + divides done in wrapper.
        out_ref[0, 0] = cls_acc[...]
        out_ref[0, 1] = reg_acc[...]
        out_ref[0, 2] = cnt_acc[...]


def rpn_loss(pred_cls, pred_reg, target_cls, target_reg, *,
             block_rows=1024, num_shards=2, boundary_dtype=jnp.bfloat16):
    """pred_cls: [1,N,2], pred_reg: [1,N,4], target_cls: [N] int, target_reg: [N,4].

    boundary_dtype: dtype for the float operands crossing the pallas_call boundary
    (bf16 by default, halves HBM traffic; pass None to keep the input dtype exactly).
    """
    n = target_cls.shape[0]
    num_cls = pred_cls.shape[-1]
    num_reg = pred_reg.shape[-1]
    assert num_cls == 2, "RPN classification is binary (bg/fg); kernel specialized to C == 2."
    assert block_rows % 32 == 0, "block_rows must be a multiple of 32 (int8 label tiles)."

    # Pack the anchor axis into full (8,128) vreg tiles; tile rows with a
    # (shards, steps) grid.  rows = shards * steps * tr.
    rows_raw = -(-n // LANES)
    tr = min(_round_up(rows_raw, 32), block_rows)
    nblocks = -(-rows_raw // tr)
    shards = max(1, min(num_shards, nblocks))
    nblocks = _round_up(nblocks, shards)
    steps = nblocks // shards
    rows = nblocks * tr
    n_pad = rows * LANES - n

    cdt = boundary_dtype if boundary_dtype is not None else pred_cls.dtype

    def pack(a):                                          # [N, K] -> [K, rows, 128]
        a = a.astype(cdt)                                 # cast BEFORE transpose/pad
        return jnp.pad(a.T, ((0, 0), (0, n_pad))).reshape(a.shape[1], rows, LANES)

    cls3 = pack(pred_cls[0])                              # [2, rows, 128]
    reg3 = pack(pred_reg[0])                              # [4, rows, 128]
    treg3 = pack(target_reg)                              # [4, rows, 128]
    tcls2 = jnp.pad(target_cls.astype(jnp.int8), (0, n_pad),
                    constant_values=-1).reshape(rows, LANES)

    out = pl.pallas_call(
        rpn_loss_kernel,
        out_shape=jax.ShapeDtypeStruct((shards, 3, 8, LANES), jnp.float32),
        grid_spec=pltpu.PrefetchScalarGridSpec(
            num_scalar_prefetch=0,
            grid=(shards, steps),
            in_specs=[
                pl.BlockSpec((num_cls, tr, LANES), lambda c, i: (0, c * steps + i, 0)),
                pl.BlockSpec((num_reg, tr, LANES), lambda c, i: (0, c * steps + i, 0)),
                pl.BlockSpec((num_reg, tr, LANES), lambda c, i: (0, c * steps + i, 0)),
                pl.BlockSpec((tr, LANES), lambda c, i: (c * steps + i, 0)),
            ],
            out_specs=pl.BlockSpec((1, 3, 8, LANES), lambda c, i: (c, 0, 0, 0)),
            scratch_shapes=[pltpu.VMEM((8, LANES), jnp.float32)] * 3,
        ),
        compiler_params=pltpu.CompilerParams(
            # Leading shard axis "parallel" (both TCs on v7x), inner reduction "arbitrary".
            dimension_semantics=("parallel", "arbitrary"),
            allow_input_fusion=[True, True, True, True],  # fuse transpose/pad/reshape in
        ),
    )(cls3, reg3, treg3, tcls2)

    sums = jnp.sum(out, axis=(0, 2, 3))                   # [cls_sum, reg_sum, valid_count]
    # NaN/inf if every label is ignored — matches PyTorch mean-over-all-ignored behavior.
    cls_loss = sums[0] / sums[2]
    reg_loss = sums[1] / sums[2]
    return cls_loss, reg_loss


def rpn_loss_ref(pred_cls, pred_reg, target_cls, target_reg):
    """Pure-JAX reference mirroring the PyTorch module (masked-sum formulation)."""
    logits = pred_cls[0].astype(jnp.float32)              # [N, C]
    tcls = target_cls.astype(jnp.int32)
    logp = jax.nn.log_softmax(logits, axis=-1)
    safe_idx = jnp.clip(tcls, 0, logits.shape[-1] - 1)
    picked = jnp.take_along_axis(logp, safe_idx[:, None], axis=-1)[:, 0]
    valid = (tcls != -1).astype(jnp.float32)
    cls_loss = -jnp.sum(picked * valid) / jnp.sum(valid)

    x = jnp.abs(pred_reg[0].astype(jnp.float32) - target_reg.astype(jnp.float32))
    sl = jnp.where(x >= BETA, x - 0.5 * BETA, 0.5 * x * x / BETA)
    fg = (tcls > 0).astype(jnp.float32)[:, None]
    reg_loss = jnp.sum(sl * fg) / jnp.sum((tcls >= 0).astype(jnp.float32))
    return cls_loss, reg_loss


def _bf16_round(x):
    return x.astype(jnp.bfloat16).astype(jnp.float32)


if __name__ == "__main__":
    key = jax.random.PRNGKey(0)
    k1, k2, k3, k4 = jax.random.split(key, 4)

    # --- Test 1: small N (non-multiple of 128 exercises the padding path) ---
    N, C = 300, 2
    pred_cls = jax.random.normal(k1, (1, N, C), dtype=jnp.float32)
    pred_reg = jax.random.normal(k2, (1, N, 4), dtype=jnp.float32)
    target_cls = jax.random.randint(k3, (N,), -1, C, dtype=jnp.int32)   # {-1, 0, 1}
    target_reg = jax.random.normal(k4, (N, 4), dtype=jnp.float32)

    cls_loss, reg_loss = rpn_loss(pred_cls, pred_reg, target_cls, target_reg)
    jax.block_until_ready((cls_loss, reg_loss))

    # Tight check against the reference evaluated on the same bf16-rounded inputs.
    ref_cls_b, ref_reg_b = rpn_loss_ref(_bf16_round(pred_cls), _bf16_round(pred_reg),
                                        target_cls, _bf16_round(target_reg))
    assert jnp.allclose(cls_loss, ref_cls_b, rtol=1e-4, atol=1e-5), (cls_loss, ref_cls_b)
    assert jnp.allclose(reg_loss, ref_reg_b, rtol=1e-4, atol=1e-5), (reg_loss, ref_reg_b)

    # Loose check against the pure-f32 reference (bf16 boundary rounding).
    ref_cls, ref_reg = rpn_loss_ref(pred_cls, pred_reg, target_cls, target_reg)
    assert jnp.allclose(cls_loss, ref_cls, rtol=2e-2, atol=2e-2), (cls_loss, ref_cls)
    assert jnp.allclose(reg_loss, ref_reg, rtol=2e-2, atol=2e-2), (reg_loss, ref_reg)

    # --- Test 2: exact f32 boundary path ---
    cls32, reg32 = rpn_loss(pred_cls, pred_reg, target_cls, target_reg,
                            boundary_dtype=None)
    jax.block_until_ready((cls32, reg32))
    assert jnp.allclose(cls32, ref_cls, rtol=1e-5, atol=1e-5), (cls32, ref_cls)
    assert jnp.allclose(reg32, ref_reg, rtol=1e-5, atol=1e-5), (reg32, ref_reg)

    # --- Test 3: larger N with small blocks to exercise multi-step + multi-shard grid ---
    N2 = 10000
    j1, j2, j3, j4 = jax.random.split(jax.random.PRNGKey(1), 4)
    pc2 = jax.random.normal(j1, (1, N2, C), dtype=jnp.float32)
    pr2 = jax.random.normal(j2, (1, N2, 4), dtype=jnp.float32)
    tc2 = jax.random.randint(j3, (N2,), -1, C, dtype=jnp.int32)
    tr2 = jax.random.normal(j4, (N2, 4), dtype=jnp.float32)

    c2, r2 = rpn_loss(pc2, pr2, tc2, tr2, block_rows=32, num_shards=2)
    jax.block_until_ready((c2, r2))
    rc2, rr2 = rpn_loss_ref(_bf16_round(pc2), _bf16_round(pr2), tc2, _bf16_round(tr2))
    assert jnp.allclose(c2, rc2, rtol=1e-4, atol=1e-5), (c2, rc2)
    assert jnp.allclose(r2, rr2, rtol=1e-4, atol=1e-5), (r2, rr2)

    print("KERNEL_OK")
</pallas_src>

<mosaic_0001>
module attributes {stable_mosaic.version = 11 : i64} {
  func.func @rpn_loss_kernel(%arg0: i32, %arg1: i32, %arg2: memref<2x32x128xbf16, #tpu.memory_space<vmem>>, %arg3: memref<4x32x128xbf16, #tpu.memory_space<vmem>>, %arg4: memref<4x32x128xbf16, #tpu.memory_space<vmem>>, %arg5: memref<32x128xi8, #tpu.memory_space<vmem>>, %arg6: memref<1x3x8x128xf32, #tpu.memory_space<vmem>>, %arg7: memref<8x128xf32, #tpu.memory_space<vmem>>, %arg8: memref<8x128xf32, #tpu.memory_space<vmem>>, %arg9: memref<8x128xf32, #tpu.memory_space<vmem>>) attributes {dimension_semantics = [#tpu.dimension_semantics<parallel>, #tpu.dimension_semantics<arbitrary>], iteration_bounds = array<i64: 1, 1>, scalar_prefetch = 0 : i64, scratch_operands = 3 : i64, tpu.core_type = #tpu.core_type<tc>, window_params = [{transform_indices = @transform_0, window_bounds = array<i64: 2, 32, 128>}, {transform_indices = @transform_1, window_bounds = array<i64: 4, 32, 128>}, {transform_indices = @transform_2, window_bounds = array<i64: 4, 32, 128>}, {transform_indices = @transform_3, window_bounds = array<i64: 32, 128>}, {transform_indices = @transform_4, window_bounds = array<i64: 1, 3, 8, 128>}]} {
    %c0_i32 = arith.constant 0 : i32
    %0 = arith.cmpi eq, %arg1, %c0_i32 : i32
    %1 = arith.extui %0 : i1 to i32
    %c0_i32_0 = arith.constant 0 : i32
    %2 = arith.cmpi ne, %1, %c0_i32_0 : i32
    scf.if %2 {
      %cst_62 = arith.constant 0.000000e+00 : f32
      %120 = vector.broadcast %cst_62 : f32 to vector<8x128xf32>
      %c0_63 = arith.constant 0 : index
      %c0_64 = arith.constant 0 : index
      %121 = vector.load %arg7[%c0_63, %c0_64] : memref<8x128xf32, #tpu.memory_space<vmem>>, vector<8x128xf32>
      tpu.vector_store %arg7[%c0_63, %c0_64], %120 {strides = array<i32>} : memref<8x128xf32, #tpu.memory_space<vmem>>, vector<8x128xf32>,
      %cst_65 = arith.constant 0.000000e+00 : f32
      %122 = vector.broadcast %cst_65 : f32 to vector<8x128xf32>
      %c0_66 = arith.constant 0 : index
      %c0_67 = arith.constant 0 : index
      %123 = vector.load %arg8[%c0_66, %c0_67] : memref<8x128xf32, #tpu.memory_space<vmem>>, vector<8x128xf32>
      tpu.vector_store %arg8[%c0_66, %c0_67], %122 {strides = array<i32>} : memref<8x128xf32, #tpu.memory_space<vmem>>, vector<8x128xf32>,
      %cst_68 = arith.constant 0.000000e+00 : f32
      %124 = vector.broadcast %cst_68 : f32 to vector<8x128xf32>
      %c0_69 = arith.constant 0 : index
      %c0_70 = arith.constant 0 : index
      %125 = vector.load %arg9[%c0_69, %c0_70] : memref<8x128xf32, #tpu.memory_space<vmem>>, vector<8x128xf32>
      tpu.vector_store %arg9[%c0_69, %c0_70], %124 {strides = array<i32>} : memref<8x128xf32, #tpu.memory_space<vmem>>, vector<8x128xf32>,
    } else {
    }
    %c0 = arith.constant 0 : index
    %c0_1 = arith.constant 0 : index
    %3 = vector.load %arg5[%c0, %c0_1] : memref<32x128xi8, #tpu.memory_space<vmem>>, vector<32x128xi8>
    %4 = arith.extsi %3 : vector<32x128xi8> to vector<32x128xi32>
    %c0_i32_2 = arith.constant 0 : i32
    %5 = vector.broadcast %c0_i32_2 : i32 to vector<32x128xi32>
    %6 = arith.cmpi sgt, %4, %5 : vector<32x128xi32>
    %c0_i32_3 = arith.constant 0 : i32
    %7 = vector.broadcast %c0_i32_3 : i32 to vector<32x128xi32>
    %8 = arith.cmpi sge, %4, %7 : vector<32x128xi32>
    %9 = arith.extui %8 : vector<32x128xi1> to vector<32x128xi32>
    %10 = arith.sitofp %9 : vector<32x128xi32> to vector<32x128xf32>
    %11 = arith.extui %6 : vector<32x128xi1> to vector<32x128xi32>
    %12 = arith.sitofp %11 : vector<32x128xi32> to vector<32x128xf32>
    %c0_4 = arith.constant 0 : index
    %c0_5 = arith.constant 0 : index
    %c0_6 = arith.constant 0 : index
    %13 = vector.load %arg2[%c0_4, %c0_5, %c0_6] : memref<2x32x128xbf16, #tpu.memory_space<vmem>>, vector<1x32x128xbf16>
    %14 = vector.shape_cast %13 : vector<1x32x128xbf16> to vector<32x128xbf16>
    %15 = arith.extf %14 : vector<32x128xbf16> to vector<32x128xf32>
    %c1 = arith.constant 1 : index
    %c0_7 = arith.constant 0 : index
    %c0_8 = arith.constant 0 : index
    %16 = vector.load %arg2[%c1, %c0_7, %c0_8] : memref<2x32x128xbf16, #tpu.memory_space<vmem>>, vector<1x32x128xbf16>
    %17 = vector.shape_cast %16 : vector<1x32x128xbf16> to vector<32x128xbf16>
    %18 = arith.extf %17 : vector<32x128xbf16> to vector<32x128xf32>
    %19 = arith.maximumf %15, %18 : vector<32x128xf32>
    %20 = arith.subf %15, %18 : vector<32x128xf32>
    %21 = math.absf %20 : vector<32x128xf32>
    %cst = arith.constant 0.000000e+00 : f32
    %22 = vector.broadcast %cst : f32 to vector<32x128xf32>
    %23 = arith.subf %22, %21 : vector<32x128xf32>
    %24 = math.exp %23 : vector<32x128xf32>
    %cst_9 = arith.constant 1.000000e+00 : f32
    %25 = vector.broadcast %cst_9 : f32 to vector<32x128xf32>
    %26 = arith.addf %25, %24 : vector<32x128xf32>
    %27 = math.log %26 : vector<32x128xf32>
    %28 = arith.addf %19, %27 : vector<32x128xf32>
    %29 = arith.select %6, %18, %15 : vector<32x128xi1>, vector<32x128xf32>
    %30 = arith.subf %28, %29 : vector<32x128xf32>
    %cst_10 = arith.constant 0.000000e+00 : f32
    %31 = vector.broadcast %cst_10 : f32 to vector<32x128xf32>
    %c0_11 = arith.constant 0 : index
    %c0_12 = arith.constant 0 : index
    %c0_13 = arith.constant 0 : index
    %32 = vector.load %arg3[%c0_11, %c0_12, %c0_13] : memref<4x32x128xbf16, #tpu.memory_space<vmem>>, vector<1x32x128xbf16>
    %33 = vector.shape_cast %32 : vector<1x32x128xbf16> to vector<32x128xbf16>
    %34 = arith.extf %33 : vector<32x128xbf16> to vector<32x128xf32>
    %c0_14 = arith.constant 0 : index
    %c0_15 = arith.constant 0 : index
    %c0_16 = arith.constant 0 : index
    %35 = vector.load %arg4[%c0_14, %c0_15, %c0_16] : memref<4x32x128xbf16, #tpu.memory_space<vmem>>, vector<1x32x128xbf16>
    %36 = vector.shape_cast %35 : vector<1x32x128xbf16> to vector<32x128xbf16>
    %37 = arith.extf %36 : vector<32x128xbf16> to vector<32x128xf32>
    %38 = arith.subf %34, %37 : vector<32x128xf32>
    %39 = math.absf %38 : vector<32x128xf32>
    %cst_17 = arith.constant 0.111111112 : f32
    %40 = vector.broadcast %cst_17 : f32 to vector<32x128xf32>
    %41 = arith.cmpf oge, %39, %40 : vector<32x128xf32>
    %cst_18 = arith.constant 0.055555556 : f32
    %42 = vector.broadcast %cst_18 : f32 to vector<32x128xf32>
    %43 = arith.subf %39, %42 : vector<32x128xf32>
    %cst_19 = arith.constant 4.500000e+00 : f32
    %44 = vector.broadcast %cst_19 : f32 to vector<32x128xf32>
    %45 = arith.mulf %44, %39 : vector<32x128xf32>
    %46 = arith.mulf %45, %39 : vector<32x128xf32>
    %47 = arith.select %41, %43, %46 : vector<32x128xi1>, vector<32x128xf32>
    %48 = arith.addf %31, %47 : vector<32x128xf32>
    %c1_20 = arith.constant 1 : index
    %c0_21 = arith.constant 0 : index
    %c0_22 = arith.constant 0 : index
    %49 = vector.load %arg3[%c1_20, %c0_21, %c0_22] : memref<4x32x128xbf16, #tpu.memory_space<vmem>>, vector<1x32x128xbf16>
    %50 = vector.shape_cast %49 : vector<1x32x128xbf16> to vector<32x128xbf16>
    %51 = arith.extf %50 : vector<32x128xbf16> to vector<32x128xf32>
    %c1_23 = arith.constant 1 : index
    %c0_24 = arith.constant 0 : index
    %c0_25 = arith.constant 0 : index
    %52 = vector.load %arg4[%c1_23, %c0_24, %c0_25] : memref<4x32x128xbf16, #tpu.memory_space<vmem>>, vector<1x32x128xbf16>
    %53 = vector.shape_cast %52 : vector<1x32x128xbf16> to vector<32x128xbf16>
    %54 = arith.extf %53 : vector<32x128xbf16> to vector<32x128xf32>
    %55 = arith.subf %51, %54 : vector<32x128xf32>
    %56 = math.absf %55 : vector<32x128xf32>
    %cst_26 = arith.constant 0.111111112 : f32
    %57 = vector.broadcast %cst_26 : f32 to vector<32x128xf32>
    %58 = arith.cmpf oge, %56, %57 : vector<32x128xf32>
    %cst_27 = arith.constant 0.055555556 : f32
    %59 = vector.broadcast %cst_27 : f32 to vector<32x128xf32>
    %60 = arith.subf %56, %59 : vector<32x128xf32>
    %cst_28 = arith.constant 4.500000e+00 : f32
    %61 = vector.broadcast %cst_28 : f32 to vector<32x128xf32>
    %62 = arith.mulf %61, %56 : vector<32x128xf32>
    %63 = arith.mulf %62, %56 : vector<32x128xf32>
    %64 = arith.select %58, %60, %63 : vector<32x128xi1>, vector<32x128xf32>
    %65 = arith.addf %48, %64 : vector<32x128xf32>
    %c2 = arith.constant 2 : index
    %c0_29 = arith.constant 0 : index
    %c0_30 = arith.constant 0 : index
    %66 = vector.load %arg3[%c2, %c0_29, %c0_30] : memref<4x32x128xbf16, #tpu.memory_space<vmem>>, vector<1x32x128xbf16>
    %67 = vector.shape_cast %66 : vector<1x32x128xbf16> to vector<32x128xbf16>
    %68 = arith.extf %67 : vector<32x128xbf16> to vector<32x128xf32>
    %c2_31 = arith.constant 2 : index
    %c0_32 = arith.constant 0 : index
    %c0_33 = arith.constant 0 : index
    %69 = vector.load %arg4[%c2_31, %c0_32, %c0_33] : memref<4x32x128xbf16, #tpu.memory_space<vmem>>, vector<1x32x128xbf16>
    %70 = vector.shape_cast %69 : vector<1x32x128xbf16> to vector<32x128xbf16>
    %71 = arith.extf %70 : vector<32x128xbf16> to vector<32x128xf32>
    %72 = arith.subf %68, %71 : vector<32x128xf32>
    %73 = math.absf %72 : vector<32x128xf32>
    %cst_34 = arith.constant 0.111111112 : f32
    %74 = vector.broadcast %cst_34 : f32 to vector<32x128xf32>
    %75 = arith.cmpf oge, %73, %74 : vector<32x128xf32>
    %cst_35 = arith.constant 0.055555556 : f32
    %76 = vector.broadcast %cst_35 : f32 to vector<32x128xf32>
    %77 = arith.subf %73, %76 : vector<32x128xf32>
    %cst_36 = arith.constant 4.500000e+00 : f32
    %78 = vector.broadcast %cst_36 : f32 to vector<32x128xf32>
    %79 = arith.mulf %78, %73 : vector<32x128xf32>
    %80 = arith.mulf %79, %73 : vector<32x128xf32>
    %81 = arith.select %75, %77, %80 : vector<32x128xi1>, vector<32x128xf32>
    %82 = arith.addf %65, %81 : vector<32x128xf32>
    %c3 = arith.constant 3 : index
    %c0_37 = arith.constant 0 : index
    %c0_38 = arith.constant 0 : index
    %83 = vector.load %arg3[%c3, %c0_37, %c0_38] : memref<4x32x128xbf16, #tpu.memory_space<vmem>>, vector<1x32x128xbf16>
    %84 = vector.shape_cast %83 : vector<1x32x128xbf16> to vector<32x128xbf16>
    %85 = arith.extf %84 : vector<32x128xbf16> to vector<32x128xf32>
    %c3_39 = arith.constant 3 : index
    %c0_40 = arith.constant 0 : index
    %c0_41 = arith.constant 0 : index
    %86 = vector.load %arg4[%c3_39, %c0_40, %c0_41] : memref<4x32x128xbf16, #tpu.memory_space<vmem>>, vector<1x32x128xbf16>
    %87 = vector.shape_cast %86 : vector<1x32x128xbf16> to vector<32x128xbf16>
    %88 = arith.extf %87 : vector<32x128xbf16> to vector<32x128xf32>
    %89 = arith.subf %85, %88 : vector<32x128xf32>
    %90 = math.absf %89 : vector<32x128xf32>
    %cst_42 = arith.constant 0.111111112 : f32
    %91 = vector.broadcast %cst_42 : f32 to vector<32x128xf32>
    %92 = arith.cmpf oge, %90, %91 : vector<32x128xf32>
    %cst_43 = arith.constant 0.055555556 : f32
    %93 = vector.broadcast %cst_43 : f32 to vector<32x128xf32>
    %94 = arith.subf %90, %93 : vector<32x128xf32>
    %cst_44 = arith.constant 4.500000e+00 : f32
    %95 = vector.broadcast %cst_44 : f32 to vector<32x128xf32>
    %96 = arith.mulf %95, %90 : vector<32x128xf32>
    %97 = arith.mulf %96, %90 : vector<32x128xf32>
    %98 = arith.select %92, %94, %97 : vector<32x128xi1>, vector<32x128xf32>
    %99 = arith.addf %82, %98 : vector<32x128xf32>
    %c0_45 = arith.constant 0 : index
    %c0_46 = arith.constant 0 : index
    %100 = vector.load %arg7[%c0_45, %c0_46] : memref<8x128xf32, #tpu.memory_space<vmem>>, vector<8x128xf32>
    %101 = arith.mulf %30, %10 : vector<32x128xf32>
    %102 = vector.shape_cast %101 : vector<32x128xf32> to vector<4x8x128xf32>
    %cst_47 = arith.constant dense<0.000000e+00> : vector<8x128xf32>
    %103 = vector.multi_reduction <add>, %102, %cst_47 [0] : vector<4x8x128xf32> to vector<8x128xf32>
    %104 = arith.addf %100, %103 : vector<8x128xf32>
    %c0_48 = arith.constant 0 : index
    %c0_49 = arith.constant 0 : index
    %105 = vector.load %arg7[%c0_48, %c0_49] : memref<8x128xf32, #tpu.memory_space<vmem>>, vector<8x128xf32>
    tpu.vector_store %arg7[%c0_48, %c0_49], %104 {strides = array<i32>} : memref<8x128xf32, #tpu.memory_space<vmem>>, vector<8x128xf32>,
    %c0_50 = arith.constant 0 : index
    %c0_51 = arith.constant 0 : index
    %106 = vector.load %arg8[%c0_50, %c0_51] : memref<8x128xf32, #tpu.memory_space<vmem>>, vector<8x128xf32>
    %107 = arith.mulf %99, %12 : vector<32x128xf32>
    %108 = vector.shape_cast %107 : vector<32x128xf32> to vector<4x8x128xf32>
    %cst_52 = arith.constant dense<0.000000e+00> : vector<8x128xf32>
    %109 = vector.multi_reduction <add>, %108, %cst_52 [0] : vector<4x8x128xf32> to vector<8x128xf32>
    %110 = arith.addf %106, %109 : vector<8x128xf32>
    %c0_53 = arith.constant 0 : index
    %c0_54 = arith.constant 0 : index
    %111 = vector.load %arg8[%c0_53, %c0_54] : memref<8x128xf32, #tpu.memory_space<vmem>>, vector<8x128xf32>
    tpu.vector_store %arg8[%c0_53, %c0_54], %110 {strides = array<i32>} : memref<8x128xf32, #tpu.memory_space<vmem>>, vector<8x128xf32>,
    %c0_55 = arith.constant 0 : index
    %c0_56 = arith.constant 0 : index
    %112 = vector.load %arg9[%c0_55, %c0_56] : memref<8x128xf32, #tpu.memory_space<vmem>>, vector<8x128xf32>
    %113 = vector.shape_cast %10 : vector<32x128xf32> to vector<4x8x128xf32>
    %cst_57 = arith.constant dense<0.000000e+00> : vector<8x128xf32>
    %114 = vector.multi_reduction <add>, %113, %cst_57 [0] : vector<4x8x128xf32> to vector<8x128xf32>
    %115 = arith.addf %112, %114 : vector<8x128xf32>
    %c0_58 = arith.constant 0 : index
    %c0_59 = arith.constant 0 : index
    %116 = vector.load %arg9[%c0_58, %c0_59] : memref<8x128xf32, #tpu.memory_space<vmem>>, vector<8x128xf32>
    tpu.vector_store %arg9[%c0_58, %c0_59], %115 {strides = array<i32>} : memref<8x128xf32, #tpu.memory_space<vmem>>, vector<8x128xf32>,
    %c0_i32_60 = arith.constant 0 : i32
    %117 = arith.cmpi eq, %arg1, %c0_i32_60 : i32
    %118 = arith.extui %117 : i1 to i32
    %c0_i32_61 = arith.constant 0 : i32
    %119 = arith.cmpi ne, %118, %c0_i32_61 : i32
    scf.if %119 {
      %c0_62 = arith.constant 0 : index
      %c0_63 = arith.constant 0 : index
      %120 = vector.load %arg7[%c0_62, %c0_63] : memref<8x128xf32, #tpu.memory_space<vmem>>, vector<8x128xf32>
      %c0_64 = arith.constant 0 : index
      %c0_65 = arith.constant 0 : index
      %c0_66 = arith.constant 0 : index
      %c0_67 = arith.constant 0 : index
      %121 = vector.load %arg6[%c0_64, %c0_65, %c0_66, %c0_67] : memref<1x3x8x128xf32, #tpu.memory_space<vmem>>, vector<1x1x8x128xf32>
      %122 = vector.shape_cast %121 : vector<1x1x8x128xf32> to vector<8x128xf32>
      %123 = vector.shape_cast %120 : vector<8x128xf32> to vector<1x1x8x128xf32>
      tpu.vector_store %arg6[%c0_64, %c0_65, %c0_66, %c0_67], %123 {strides = array<i32>} : memref<1x3x8x128xf32, #tpu.memory_space<vmem>>, vector<1x1x8x128xf32>,
      %c0_68 = arith.constant 0 : index
      %c0_69 = arith.constant 0 : index
      %124 = vector.load %arg8[%c0_68, %c0_69] : memref<8x128xf32, #tpu.memory_space<vmem>>, vector<8x128xf32>
      %c0_70 = arith.constant 0 : index
      %c1_71 = arith.constant 1 : index
      %c0_72 = arith.constant 0 : index
      %c0_73 = arith.constant 0 : index
      %125 = vector.load %arg6[%c0_70, %c1_71, %c0_72, %c0_73] : memref<1x3x8x128xf32, #tpu.memory_space<vmem>>, vector<1x1x8x128xf32>
      %126 = vector.shape_cast %125 : vector<1x1x8x128xf32> to vector<8x128xf32>
      %127 = vector.shape_cast %124 : vector<8x128xf32> to vector<1x1x8x128xf32>
      tpu.vector_store %arg6[%c0_70, %c1_71, %c0_72, %c0_73], %127 {strides = array<i32>} : memref<1x3x8x128xf32, #tpu.memory_space<vmem>>, vector<1x1x8x128xf32>,
      %c0_74 = arith.constant 0 : index
      %c0_75 = arith.constant 0 : index
      %128 = vector.load %arg9[%c0_74, %c0_75] : memref<8x128xf32, #tpu.memory_space<vmem>>, vector<8x128xf32>
      %c0_76 = arith.constant 0 : index
      %c2_77 = arith.constant 2 : index
      %c0_78 = arith.constant 0 : index
      %c0_79 = arith.constant 0 : index
      %129 = vector.load %arg6[%c0_76, %c2_77, %c0_78, %c0_79] : memref<1x3x8x128xf32, #tpu.memory_space<vmem>>, vector<1x1x8x128xf32>
      %130 = vector.shape_cast %129 : vector<1x1x8x128xf32> to vector<8x128xf32>
      %131 = vector.shape_cast %128 : vector<8x128xf32> to vector<1x1x8x128xf32>
      tpu.vector_store %arg6[%c0_76, %c2_77, %c0_78, %c0_79], %131 {strides = array<i32>} : memref<1x3x8x128xf32, #tpu.memory_space<vmem>>, vector<1x1x8x128xf32>,
    } else {
    }
    return
  }
  func.func @transform_0(%arg0: i32, %arg1: i32) -> (i32, i32, i32) {
    %c1_i32 = arith.constant 1 : i32
    %0 = arith.muli %arg0, %c1_i32 : i32
    %1 = arith.addi %0, %arg1 : i32
    %c0_i32 = arith.constant 0 : i32
    %c0_i32_0 = arith.constant 0 : i32
    %c0_i32_1 = arith.constant 0 : i32
    return %c0_i32, %1, %c0_i32_0 : i32, i32, i32
  }
  func.func @transform_1(%arg0: i32, %arg1: i32) -> (i32, i32, i32) {
    %c1_i32 = arith.constant 1 : i32
    %0 = arith.muli %arg0, %c1_i32 : i32
    %1 = arith.addi %0, %arg1 : i32
    %c0_i32 = arith.constant 0 : i32
    %c0_i32_0 = arith.constant 0 : i32
    %c0_i32_1 = arith.constant 0 : i32
    return %c0_i32, %1, %c0_i32_0 : i32, i32, i32
  }
  func.func @transform_2(%arg0: i32, %arg1: i32) -> (i32, i32, i32) {
    %c1_i32 = arith.constant 1 : i32
    %0 = arith.muli %arg0, %c1_i32 : i32
    %1 = arith.addi %0, %arg1 : i32
    %c0_i32 = arith.constant 0 : i32
    %c0_i32_0 = arith.constant 0 : i32
    %c0_i32_1 = arith.constant 0 : i32
    return %c0_i32, %1, %c0_i32_0 : i32, i32, i32
  }
  func.func @transform_3(%arg0: i32, %arg1: i32) -> (i32, i32) {
    %c1_i32 = arith.constant 1 : i32
    %0 = arith.muli %arg0, %c1_i32 : i32
    %1 = arith.addi %0, %arg1 : i32
    %c0_i32 = arith.constant 0 : i32
    %c0_i32_0 = arith.constant 0 : i32
    return %1, %c0_i32 : i32, i32
  }
  func.func @transform_4(%arg0: i32, %arg1: i32) -> (i32, i32, i32, i32) {
    %c0_i32 = arith.constant 0 : i32
    %c0_i32_0 = arith.constant 0 : i32
    %c0_i32_1 = arith.constant 0 : i32
    %c0_i32_2 = arith.constant 0 : i32
    return %arg0, %c0_i32, %c0_i32_0, %c0_i32_1 : i32, i32, i32, i32
  }
}

</mosaic_0001>

<bundles_post_ra>
// kernel: tpu_custom_call.1
= control target key start
LH: loop header
LB: loop body
LE: loop exit
PB: predicated region body
PF: predicated region fallthrough
CT: control target
= control target key end

     0   :  { %9 = vsyncpa [#allocation6], 0  ;;  %s993_s0 = inlined_call_operand.hbm [shape: bf16[2,32,128], index: 0, kind: input, shape index: {}]   ;;  %s994_s1 = inlined_call_operand.hbm [shape: bf16[4,32,128], index: 1, kind: input, shape index: {}]   ;;  %s995_s2 = inlined_call_operand.hbm [shape: bf16[4,32,128], index: 2, kind: input, shape index: {}]   ;;  %s996_s3 = inlined_call_operand.vmem [shape: s8[32,128], index: 3, kind: input, shape index: {}]   ;;  %s997_s4 = inlined_call_operand.hbm [shape: f32[1,3,8,128], index: 4, kind: output, shape index: {}]  }
   0x1   :  { %10 = vsyncpa [#allocation9], 0 }
   0x2   :  { %11 = vsyncpa [#allocation7], 0  ;;  %s687_s15 = smov [#allocation8]   ;;  %s688_s17 = smov [#allocation5]  }
   0x3   :  { %s37_s16 = sshll.u32 %s687_s15, 4  ;;  %s21_s18 = sshll.u32 %s688_s17, 4  ;;  %s38_s16 = int_to_ptr.vmem [resolvable:$true] %s37_s16  ;;  %s721_s18 = int_to_ptr.vmem [resolvable:$true] %s21_s18 }
   0x4   :  { %s593_s21 = scalar_lea.hbm %s994_s1, 1024 }
   0x5   :  { %p594_p0 = scmp.ne.s32.totalorder %s994_s1, %s593_s21  ;;  %p597_p1 = scmp.lt.u32.totalorder %s593_s21, %s994_s1 }
   0x7   :  { %p599_p2 = pnand %p597_p1, %p594_p0 }
   0x9   :  { %602 = shalt.err (!%p599_p2)
}
   0xa   :  { %s603_s26 = scalar_lea.vmem %s38_s16, 1024  ;;  %p608_p4 = scmp.lt.s32.totalorder %s38_s16, %s38_s16 }
   0xb   :  { %p604_p3 = scmp.ne.s32.totalorder %s38_s16, %s603_s26  ;;  %p609_p5 = scmp.lt.s32.totalorder %s603_s26, %s603_s26 }
   0xd   :  { %p610_p6 = por %p609_p5, %p608_p4 }
   0xf   :  { %p611_p7 = pnand %p610_p6, %p604_p3 }
  0x11   :  { %614 = shalt.err (!%p611_p7)
}
  0x12   :  { %s689_s27 = smov 64   ;;  %s690_s28 = smov 4  }
  0x13   :  { %43 = dma.hbm_to_vmem [thread:$0]  %s994_s1, 1024, %s38_s16, [#allocation9], %s689_s27, %s689_s27, %s690_s28  }
  0x14   :  { %s615_s7 = scalar_lea.hbm %s993_s0, 512 }
  0x15   :  { %p616_p8 = scmp.ne.s32.totalorder %s993_s0, %s615_s7  ;;  %p619_p9 = scmp.lt.u32.totalorder %s615_s7, %s993_s0 }
  0x17   :  { %p621_p10 = pnand %p619_p9, %p616_p8 }
  0x19   :  { %624 = shalt.err (!%p621_p10)
}
  0x1a   :  { %s625_s12 = scalar_lea.vmem %s721_s18, 512  ;;  %p630_p12 = scmp.lt.s32.totalorder %s721_s18, %s721_s18 }
  0x1b   :  { %p626_p11 = scmp.ne.s32.totalorder %s721_s18, %s625_s12  ;;  %p631_p13 = scmp.lt.s32.totalorder %s625_s12, %s625_s12 }
  0x1d   :  { %p632_p0 = por %p631_p13, %p630_p12 }
  0x1f   :  { %p633_p1 = pnand %p632_p0, %p626_p11 }
  0x21   :  { %636 = shalt.err (!%p633_p1)
}
  0x22   :  { %27 = dma.hbm_to_vmem [thread:$0]  %s993_s0, 512, %s721_s18, [#allocation6], %s689_s27, %s689_s27, %s690_s28  }
  0x23   :  { %s691_s14 = smov [#allocation10]   ;;  %s637_s19 = scalar_lea.hbm %s995_s2, 1024 }
  0x24   :  { %s53_s15 = sshll.u32 %s691_s14, 4  ;;  %p638_p2 = scmp.ne.s32.totalorder %s995_s2, %s637_s19  ;;  %s54_s15 = int_to_ptr.vmem [resolvable:$true] %s53_s15 }
  0x25   :  { %p641_p3 = scmp.lt.u32.totalorder %s637_s19, %s995_s2 }
  0x27   :  { %p643_p4 = pnand %p641_p3, %p638_p2 }
  0x29   :  { %646 = shalt.err (!%p643_p4)
}
  0x2a   :  { %s647_s24 = scalar_lea.vmem %s54_s15, 1024  ;;  %p652_p6 = scmp.lt.s32.totalorder %s54_s15, %s54_s15 }
  0x2b   :  { %p648_p5 = scmp.ne.s32.totalorder %s54_s15, %s647_s24  ;;  %p653_p7 = scmp.lt.s32.totalorder %s647_s24, %s647_s24 }
  0x2d   :  { %p654_p8 = por %p653_p7, %p652_p6 }
  0x2f   :  { %p655_p9 = pnand %p654_p8, %p648_p5 }
  0x31   :  { %658 = shalt.err (!%p655_p9)
}
  0x32   :  { %59 = dma.hbm_to_vmem [thread:$0]  %s995_s2, 1024, %s54_s15, [#allocation9], %s689_s27, %s689_s27, %s690_s28  }
  0x33   :  { %681 = dma.done.wait [#allocation6], 512  }
  0x34   :  { %682 = vsyncadd [#allocation6], 4294966784 }
  0x35   :  { %683 = dma.done.wait [#allocation9], 2048  }
  0x36   :  { %684 = vsyncadd [#allocation9], 4294965248  ;;  %v479_v0 = vld [vmem:[#allocation5] sm:$0xff]   ;;  %v558_v1 = vld [vmem:[#allocation5 + $0x8] sm:$0xff]   ;;  %v692_v52 = vmov 0.0   ;;  %s693_s2 = smov [#allocation11]  }
  0x37   :  { %v487_v2 = vld [vmem:[#allocation5 + $0x10] sm:$0xff]   ;;  %v559_v3 = vld [vmem:[#allocation5 + $0x18] sm:$0xff]   ;;  %v776_v4 = vld [vmem:[%s996_s3] sm:$0xff]  ;;  %v778_v5 = vunpack.c.l.bf16 %v479_v0  ;;  %v780_v6 = vunpack.c.h.bf16 %v479_v0  ;;  %v782_v7 = vunpack.c.l.bf16 %v558_v1  ;;  %v784_v8 = vunpack.c.h.bf16 %v558_v1  ;;  %s435_s3 = sshll.u32 %s693_s2, 4  ;;  %s436_s3 = int_to_ptr.vmem [resolvable:$true] %s435_s3 }
  0x38   :  { %v786_v9 = vunpack.c.l.bf16 %v487_v2  ;;  %v788_v10 = vunpack.c.h.bf16 %v487_v2  ;;  %v790_v11 = vunpack.c.l.bf16 %v559_v3  ;;  %v792_v12 = vunpack.c.h.bf16 %v559_v3  ;;  %v495_v16 = vld [vmem:[#allocation8] sm:$0xff]   ;;  %v560_v21 = vld [vmem:[#allocation8 + $0x8] sm:$0xff]   ;;  %v511_v58 = vld [vmem:[#allocation8 + $0x10] sm:$0xff]   ;;  %s659_s27 = scalar_lea.vmem %s436_s3, 384  ;;  %p664_p11 = scmp.lt.s32.totalorder %s436_s3, %s436_s3 }
  0x39   :  { %v102_v13 = vunpack.c.0.s8 %v776_v4  ;;  %v103_v14 = vunpack.c.1.s8 %v776_v4  ;;  %v104_v15 = vunpack.c.2.s8 %v776_v4  ;;  %v105_v22 = vunpack.c.3.s8 %v776_v4  ;;  %v503_v26 = vld [vmem:[#allocation10] sm:$0xff]   ;;  %v561_v27 = vld [vmem:[#allocation10 + $0x8] sm:$0xff]   ;;  %v562_v62 = vld [vmem:[#allocation8 + $0x18] sm:$0xff]   ;;  %p660_p10 = scmp.ne.s32.totalorder %s436_s3, %s659_s27  ;;  %p665_p12 = scmp.lt.s32.totalorder %s659_s27, %s659_s27 }
  0x3a   :  { %v151_v17 = vsub.f32 %v778_v5, %v786_v9  ;;  %v152_v18 = vsub.f32 %v780_v6, %v788_v10  ;;  %v153_v19 = vsub.f32 %v782_v7, %v790_v11  ;;  %v154_v20 = vsub.f32 %v784_v8, %v792_v12  ;;  %v519_v2 = vld [vmem:[#allocation10 + $0x10] sm:$0xff]  }
  0x3b   :  { %vm808_vm0 = vcmp.ge.s32.totalorder %v102_v13, 0  ;;  %vm814_vm1 = vcmp.ge.s32.totalorder %v103_v14, 0  ;;  %vm820_vm2 = vcmp.ge.s32.totalorder %v104_v15, 0  ;;  %v496_v31 = vunpack.c.l.bf16 %v495_v16  ;;  %p666_p13 = por %p665_p12, %p664_p11 }
  0x3c   :  { %v155_v28 = vand.u32 2147483647, %v151_v17  ;;  %v156_v29 = vand.u32 2147483647, %v152_v18  ;;  %v157_v30 = vand.u32 2147483647, %v153_v19  ;;  %v497_v33 = vunpack.c.h.bf16 %v495_v16 }
  0x3d   :  { %v158_v32 = vand.u32 2147483647, %v154_v20  ;;  %v500_v34 = vunpack.c.l.bf16 %v560_v21  ;;  %v501_v35 = vunpack.c.h.bf16 %v560_v21  ;;  %v504_v39 = vunpack.c.l.bf16 %v503_v26  ;;  %v563_v18 = vld [vmem:[#allocation10 + $0x18] sm:$0xff]   ;;  %p667_p0 = pnand %p666_p13, %p660_p10 }
  0x3e   :  { %v159_v36 = vsub.f32 0.0, %v155_v28  ;;  %v160_v37 = vsub.f32 0.0, %v156_v29  ;;  %v161_v38 = vsub.f32 0.0, %v157_v30  ;;  %v505_v41 = vunpack.c.h.bf16 %v503_v26 }
  0x3f   :  { %v162_v40 = vsub.f32 0.0, %v158_v32  ;;  %v508_v42 = vunpack.c.l.bf16 %v561_v27  ;;  %v509_v43 = vunpack.c.h.bf16 %v561_v27  ;;  %v211_v47 = vsub.f32 %v496_v31, %v504_v39 }
  0x40   :  { %v163_v44 = vmul.f32 1.442695, %v159_v36  ;;  %v165_v45 = vmul.f32 1.442695, %v160_v37  ;;  %v167_v46 = vmul.f32 1.442695, %v161_v38  ;;  %v212_v49 = vsub.f32 %v497_v33, %v505_v41 }
  0x41   :  { %v169_v48 = vmul.f32 1.442695, %v162_v40  ;;  %v213_v50 = vsub.f32 %v500_v34, %v508_v42  ;;  %v214_v51 = vsub.f32 %v501_v35, %v509_v43  ;;  %vm113_vm3 = vcmp.ge.s32.totalorder %v105_v22, 0  ;;  %v527_v36 = vld [vmem:[#allocation8 + $0x20] sm:$0xff]   ;;  %v564_v41 = vld [vmem:[#allocation8 + $0x28] sm:$0xff]  }
  0x42   :  { %v829_v53 = vsel %vm808_vm0, 1.0, %v692_v52  ;;  %577 = vpow2.f32 %v163_v44  ;;  %v215_v54 = vand.u32 2147483647, %v211_v47  ;;  %v834_v55 = vsel %vm814_vm1, 1.0, %v692_v52 }
  0x43   :  { %579 = vpow2.f32 %v165_v45  ;;  %v836_v56 = vand.u32 2147483647, %v212_v49  ;;  %v838_v57 = vand.u32 2147483647, %v213_v50  ;;  %v843_v59 = vsel %vm820_vm2, 1.0, %v692_v52 }
  0x44   :  { %581 = vpow2.f32 %v167_v46  ;;  %v845_v60 = vand.u32 2147483647, %v214_v51  ;;  %v227_v61 = vmul.f32 4.5, %v215_v54  ;;  %v848_v63 = vsel %vm113_vm3, 1.0, %v692_v52 }
  0x45   :  { %v147_v0 = vmax.f32 %v778_v5, %v786_v9  ;;  %v148_v1 = vmax.f32 %v780_v6, %v788_v10  ;;  %583 = vpow2.f32 %v169_v48  ;;  %vm219_vm4 = vcmp.ge.f32.partialorder %v215_v54, 0.11111111 }
  0x46   :  { %v462_v3 = vadd.f32 -0.055555556, %v215_v54  ;;  %v512_v16 = vunpack.c.l.bf16 %v511_v58  ;;  %v513_v17 = vunpack.c.h.bf16 %v511_v58  ;;  %v228_v19 = vmul.f32 4.5, %v836_v56 }
  0x47   :  { %v229_v20 = vmul.f32 4.5, %v838_v57  ;;  %v231_v21 = vmul.f32 %v227_v61, %v215_v54  ;;  %v516_v23 = vunpack.c.l.bf16 %v562_v62  ;;  %v230_v24 = vmul.f32 4.5, %v845_v60 }
  0x48   :  { %v517_v25 = vunpack.c.h.bf16 %v562_v62  ;;  %v520_v26 = vunpack.c.l.bf16 %v519_v2  ;;  %v521_v27 = vunpack.c.h.bf16 %v519_v2  ;;  %v149_v28 = vmax.f32 %v782_v7, %v790_v11 }
  0x49   :  { %v150_v29 = vmax.f32 %v784_v8, %v792_v12  ;;  %v463_v30 = vadd.f32 -0.055555556, %v836_v56  ;;  %v524_v31 = vunpack.c.l.bf16 %v563_v18  ;;  %vm220_vm5 = vcmp.ge.f32.partialorder %v836_v56, 0.11111111 }
  0x4a   :  { %v864_v32 = vadd.f32 -0.055555556, %v838_v57  ;;  %v525_v33 = vunpack.c.h.bf16 %v563_v18  ;;  %v261_v34 = vsub.f32 %v512_v16, %v520_v26  ;;  %v262_v35 = vsub.f32 %v513_v17, %v521_v27 }
  0x4b   :  { %v867_v37 = vadd.f32 -0.055555556, %v845_v60  ;;  %v232_v38 = vmul.f32 %v228_v19, %v836_v56  ;;  %v871_v39 = vsel %vm219_vm4, %v462_v3, %v231_v21  ;;  %v263_v40 = vsub.f32 %v516_v23, %v524_v31 }
  0x4c   :  { %v578_v42 = vpop.eup %577  ;;  %vm221_vm6 = vcmp.ge.f32.partialorder %v838_v57, 0.11111111  ;;  %v233_v43 = vmul.f32 %v229_v20, %v838_v57  ;;  %v876_v44 = vmul.f32 %v230_v24, %v845_v60  ;;  %v264_v45 = vsub.f32 %v517_v25, %v525_v33  ;;  %v565_v20 = vld [vmem:[#allocation10 + $0x28] sm:$0xff]  }
  0x4d   :  { %v265_v46 = vand.u32 2147483647, %v261_v34  ;;  %v580_v47 = vpop.eup %579  ;;  %vm880_vm7 = vcmp.gt.s32.totalorder %v102_v13, 0  ;;  %vm886_vm8 = vcmp.gt.s32.totalorder %v103_v14, 0  ;;  %vm892_vm9 = vcmp.gt.s32.totalorder %v104_v15, 0 }
  0x4e   :  { %vm898_vm10 = vcmp.gt.s32.totalorder %v105_v22, 0  ;;  %v171_v13 = vadd.f32 1.0, %v578_v42  ;;  %v266_v54 = vand.u32 2147483647, %v262_v35  ;;  %v528_v58 = vunpack.c.l.bf16 %v527_v36  ;;  %v582_v14 = vpop.eup %581  ;;  %v535_v22 = vld [vmem:[#allocation10 + $0x20] sm:$0xff]  }
  0x4f   :  { %v529_v61 = vunpack.c.h.bf16 %v527_v36  ;;  %v172_v62 = vadd.f32 1.0, %v580_v47  ;;  %vm222_vm11 = vcmp.ge.f32.partialorder %v845_v60, 0.11111111  ;;  %v267_v2 = vand.u32 2147483647, %v263_v40  ;;  %v584_v16 = vpop.eup %583 }
  0x50   :  { %v268_v3 = vand.u32 2147483647, %v264_v45  ;;  %v532_v15 = vunpack.c.l.bf16 %v564_v41  ;;  %v173_v17 = vadd.f32 1.0, %v582_v14  ;;  %585 = vlog2.f32 %v171_v13 }
  0x51   :  { %v277_v18 = vmul.f32 4.5, %v265_v46  ;;  %v533_v4 = vunpack.c.h.bf16 %v564_v41  ;;  %v174_v19 = vadd.f32 1.0, %v584_v16  ;;  %587 = vlog2.f32 %v172_v62 }
  0x52   :  { %vm269_vm12 = vcmp.ge.f32.partialorder %v265_v46, 0.11111111  ;;  %vm270_vm13 = vcmp.ge.f32.partialorder %v266_v54, 0.11111111  ;;  %589 = vlog2.f32 %v173_v17  ;;  %v466_v21 = vadd.f32 -0.055555556, %v265_v46 }
  0x53   :  { %v467_v23 = vadd.f32 -0.055555556, %v266_v54  ;;  %v468_v24 = vadd.f32 -0.055555556, %v267_v2  ;;  %591 = vlog2.f32 %v174_v19  ;;  %v278_v25 = vmul.f32 4.5, %v266_v54 }
  0x54   :  { %v279_v26 = vmul.f32 4.5, %v267_v2  ;;  %v280_v27 = vmul.f32 4.5, %v268_v3  ;;  %v281_v31 = vmul.f32 %v277_v18, %v265_v46  ;;  %v536_v33 = vunpack.c.l.bf16 %v535_v22 }
  0x55   :  { %v537_v34 = vunpack.c.h.bf16 %v535_v22  ;;  %v540_v35 = vunpack.c.l.bf16 %v565_v20  ;;  %vm271_vm14 = vcmp.ge.f32.partialorder %v267_v2, 0.11111111  ;;  %v282_v36 = vmul.f32 %v278_v25, %v266_v54 }
  0x56   :  { %v283_v40 = vmul.f32 %v279_v26, %v267_v2  ;;  %v541_v41 = vunpack.c.h.bf16 %v565_v20  ;;  %v236_v42 = vsel %vm220_vm5, %v463_v30, %v232_v38  ;;  %vm272_vm15 = vcmp.ge.f32.partialorder %v268_v3, 0.11111111 }
  0x57   :  { %v469_v45 = vadd.f32 -0.055555556, %v268_v3  ;;  %v284_v47 = vmul.f32 %v280_v27, %v268_v3  ;;  %v285_v13 = vsel %vm269_vm12, %v466_v21, %v281_v31  ;;  %v286_v14 = vsel %vm270_vm13, %v467_v23, %v282_v36 }
  0x58   :  { %v311_v62 = vsub.f32 %v528_v58, %v536_v33  ;;  %v312_v16 = vsub.f32 %v529_v61, %v537_v34  ;;  %v237_v17 = vsel %vm221_vm6, %v864_v32, %v233_v43  ;;  %v287_v18 = vsel %vm271_vm14, %v468_v24, %v283_v40  ;;  %v543_v32 = vld [vmem:[#allocation8 + $0x30] sm:$0xff]  }
  0x59   :  { %v313_v22 = vsub.f32 %v532_v15, %v540_v35  ;;  %v314_v2 = vsub.f32 %v533_v4, %v541_v41  ;;  %v187_v56 = vsel %vm880_vm7, %v786_v9, %v778_v5  ;;  %v188_v30 = vsel %vm886_vm8, %v788_v10, %v780_v6  ;;  %v566_v15 = vld [vmem:[#allocation8 + $0x38] sm:$0xff]   ;;  %v551_v4 = vld [vmem:[#allocation10 + $0x30] sm:$0xff]  }
  0x5a   :  { %v189_v38 = vsel %vm892_vm9, %v790_v11, %v782_v7  ;;  %v190_v57 = vsel %vm898_vm10, %v792_v12, %v784_v8  ;;  %v586_v43 = vpop.eup %585  ;;  %v930_v46 = vsel %vm222_vm11, %v867_v37, %v876_v44  ;;  %v933_v54 = vsel %vm272_vm15, %v469_v45, %v284_v47 }
  0x5b   :  { %v936_v58 = vadd.f32 %v285_v13, %v871_v39  ;;  %v938_v61 = vadd.f32 %v286_v14, %v236_v42  ;;  %v588_v19 = vpop.eup %587  ;;  %v176_v20 = vmul.f32 0.6931472, %v586_v43  ;;  %v940_v21 = vadd.f32 %v287_v18, %v237_v17  ;;  %v567_v13 = vld [vmem:[#allocation10 + $0x38] sm:$0xff]  }
  0x5c   :  { %v315_v23 = vand.u32 2147483647, %v311_v62  ;;  %v316_v24 = vand.u32 2147483647, %v312_v16  ;;  %v590_v25 = vpop.eup %589  ;;  %v178_v60 = vmul.f32 0.6931472, %v588_v19  ;;  %v544_v3 = vunpack.c.l.bf16 %v543_v32 }
  0x5d   :  { %v317_v37 = vand.u32 2147483647, %v313_v22  ;;  %v318_v44 = vand.u32 2147483647, %v314_v2  ;;  %v592_v26 = vpop.eup %591  ;;  %v180_v27 = vmul.f32 0.6931472, %v590_v25  ;;  %v183_v39 = vadd.f32 %v176_v20, %v147_v0 }
  0x5e   :  { %v545_v31 = vunpack.c.h.bf16 %v543_v32  ;;  %v548_v33 = vunpack.c.l.bf16 %v566_v15  ;;  %v182_v34 = vmul.f32 0.6931472, %v592_v26  ;;  %v184_v35 = vadd.f32 %v178_v60, %v148_v1 }
  0x5f   :  { %vm319_vm0 = vcmp.ge.f32.partialorder %v315_v23, 0.11111111  ;;  %v549_v36 = vunpack.c.h.bf16 %v566_v15  ;;  %v185_v40 = vadd.f32 %v180_v27, %v149_v28  ;;  %v191_v41 = vsub.f32 %v183_v39, %v187_v56 }
  0x60   :  { %v327_v42 = vmul.f32 4.5, %v315_v23  ;;  %v552_v45 = vunpack.c.l.bf16 %v551_v4  ;;  %v186_v5 = vadd.f32 %v182_v34, %v150_v29  ;;  %v192_v9 = vsub.f32 %v184_v35, %v188_v30 }
  0x61   :  { %v328_v0 = vmul.f32 4.5, %v316_v24  ;;  %v329_v47 = vmul.f32 4.5, %v317_v37  ;;  %v193_v14 = vsub.f32 %v185_v40, %v189_v38  ;;  %v394_v6 = vmul.f32 %v829_v53, %v191_v41 }
  0x62   :  { %v330_v10 = vmul.f32 4.5, %v318_v44  ;;  %v553_v1 = vunpack.c.h.bf16 %v551_v4  ;;  %v194_v62 = vsub.f32 %v186_v5, %v190_v57  ;;  %v395_v7 = vmul.f32 %v834_v55, %v192_v9 }
  0x63   :  { %v470_v11 = vadd.f32 -0.055555556, %v315_v23  ;;  %v471_v28 = vadd.f32 -0.055555556, %v316_v24  ;;  %v396_v16 = vmul.f32 %v843_v59, %v193_v14  ;;  %v472_v17 = vadd.f32 -0.055555556, %v317_v37 }
  0x64   :  { %v331_v18 = vmul.f32 %v327_v42, %v315_v23  ;;  %v556_v8 = vunpack.c.l.bf16 %v567_v13  ;;  %v397_v12 = vmul.f32 %v848_v63, %v194_v62  ;;  %v398_v29 = vadd.f32 %v395_v7, %v394_v6 }
  0x65   :  { %v332_v22 = vmul.f32 %v328_v0, %v316_v24  ;;  %v333_v2 = vmul.f32 %v329_v47, %v317_v37  ;;  %vm320_vm1 = vcmp.ge.f32.partialorder %v316_v24, 0.11111111  ;;  %vm321_vm2 = vcmp.ge.f32.partialorder %v317_v37, 0.11111111 }
  0x66   :  { %v473_v56 = vadd.f32 -0.055555556, %v318_v44  ;;  %v334_v30 = vmul.f32 %v330_v10, %v318_v44  ;;  %v399_v38 = vadd.f32 %v398_v29, %v396_v16  ;;  %v557_v57 = vunpack.c.h.bf16 %v567_v13 }
  0x67   :  { %v361_v32 = vsub.f32 %v544_v3, %v552_v45  ;;  %v362_v43 = vsub.f32 %v545_v31, %v553_v1  ;;  %vm322_vm3 = vcmp.ge.f32.partialorder %v318_v44, 0.11111111  ;;  %v335_v15 = vsel %vm319_vm0, %v470_v11, %v331_v18 }
  0x68   :  { %v363_v4 = vsub.f32 %v548_v33, %v556_v8  ;;  %v414_v19 = vadd.f32 %v834_v55, %v829_v53  ;;  %v400_v20 = vadd.f32 %v399_v38, %v397_v12  ;;  %v336_v25 = vsel %vm320_vm1, %v471_v28, %v332_v22 }
  0x69   :  { %v337_v60 = vsel %vm321_vm2, %v472_v17, %v333_v2  ;;  %v364_v26 = vsub.f32 %v549_v36, %v557_v57  ;;  %v365_v27 = vand.u32 2147483647, %v361_v32  ;;  %v366_v24 = vand.u32 2147483647, %v362_v43 }
  0x6a   :  { %v367_v37 = vand.u32 2147483647, %v363_v4  ;;  %v415_v39 = vadd.f32 %v843_v59, %v414_v19  ;;  %423 = vst [vmem:[#allocation11] sm:$0xff] %v400_v20  ;;  %v292_v3 = vadd.f32 %v933_v54, %v930_v46  ;;  %v338_v44 = vsel %vm322_vm3, %v473_v56, %v334_v30 }
  0x6b   :  { %v339_v23 = vadd.f32 %v335_v15, %v936_v58  ;;  %v368_v31 = vand.u32 2147483647, %v364_v26  ;;  %v340_v33 = vadd.f32 %v336_v25, %v938_v61  ;;  %vm369_vm4 = vcmp.ge.f32.partialorder %v365_v27, 0.11111111 }
  0x6c   :  { %v474_v53 = vadd.f32 -0.055555556, %v365_v27  ;;  %v416_v55 = vadd.f32 %v848_v63, %v415_v39  ;;  %v341_v34 = vadd.f32 %v337_v60, %v940_v21  ;;  %v475_v35 = vadd.f32 -0.055555556, %v366_v24 }
  0x6d   :  { %v476_v36 = vadd.f32 -0.055555556, %v367_v37  ;;  %v477_v40 = vadd.f32 -0.055555556, %v368_v31  ;;  %v377_v59 = vmul.f32 4.5, %v365_v27  ;;  %v378_v41 = vmul.f32 4.5, %v366_v24 }
  0x6e   :  { %v379_v42 = vmul.f32 4.5, %v367_v37  ;;  %v380_v45 = vmul.f32 4.5, %v368_v31  ;;  %429 = vst [vmem:[#allocation11 + $0x10] sm:$0xff] %v416_v55  ;;  %v342_v46 = vadd.f32 %v338_v44, %v292_v3  ;;  %vm370_vm5 = vcmp.ge.f32.partialorder %v366_v24, 0.11111111 }
  0x6f   :  { %vm371_vm6 = vcmp.ge.f32.partialorder %v367_v37, 0.11111111  ;;  %vm372_vm11 = vcmp.ge.f32.partialorder %v368_v31, 0.11111111  ;;  %v381_v54 = vmul.f32 %v377_v59, %v365_v27  ;;  %v382_v58 = vmul.f32 %v378_v41, %v366_v24 }
  0x70   :  { %v383_v61 = vmul.f32 %v379_v42, %v367_v37  ;;  %v384_v5 = vmul.f32 %v380_v45, %v368_v31  ;;  %v458_v63 = vsel %vm880_vm7, 1.0, %v692_v52  ;;  %v459_v21 = vsel %vm886_vm8, 1.0, %v692_v52 }
  0x71   :  { %v460_v9 = vsel %vm892_vm9, 1.0, %v692_v52  ;;  %v385_v0 = vsel %vm369_vm4, %v474_v53, %v381_v54  ;;  %v386_v47 = vsel %vm370_vm5, %v475_v35, %v382_v58  ;;  %v461_v48 = vsel %vm898_vm10, 1.0, %v692_v52 }
  0x72   :  { %v387_v13 = vsel %vm371_vm6, %v476_v36, %v383_v61  ;;  %v388_v14 = vsel %vm372_vm11, %v477_v40, %v384_v5  ;;  %v389_v6 = vadd.f32 %v385_v0, %v339_v23  ;;  %v390_v10 = vadd.f32 %v386_v47, %v340_v33 }
  0x73   :  { %v391_v1 = vadd.f32 %v387_v13, %v341_v34  ;;  %v392_v62 = vadd.f32 %v388_v14, %v342_v46 }
  0x74   :  { %v404_v7 = vmul.f32 %v458_v63, %v389_v6  ;;  %v405_v49 = vmul.f32 %v459_v21, %v390_v10 }
  0x75   :  { %v406_v11 = vmul.f32 %v460_v9, %v391_v1  ;;  %v407_v28 = vmul.f32 %v461_v48, %v392_v62 }
  0x76   :  { %v408_v16 = vadd.f32 %v405_v49, %v404_v7 }
  0x78   :  { %v409_v50 = vadd.f32 %v408_v16, %v406_v11 }
  0x7a   :  { %v410_v17 = vadd.f32 %v409_v50, %v407_v28 }
  0x7c   :  { %426 = vst [vmem:[#allocation11 + $0x8] sm:$0xff] %v410_v17 }
  0x7d   :  { %670 = shalt.err (!%p667_p0)
}
  0x7e   :  { %s671_s30 = scalar_lea.hbm %s997_s4, 384 }
  0x7f   :  { %p672_p1 = scmp.ne.s32.totalorder %s997_s4, %s671_s30  ;;  %p675_p2 = scmp.lt.u32.totalorder %s671_s30, %s997_s4 }
  0x81   :  { %p677_p3 = pnand %p675_p2, %p672_p1 }
  0x83   :  { %680 = shalt.err (!%p677_p3)
}
  0x84   :  { %s694_s9 = smov 128   ;;  %s695_s10 = smov 8  }
  0x85   :  { %441 = dma.vmem_to_hbm [thread:$0]  %s436_s3, 384, %s997_s4, [#allocation7], %s694_s9, %s694_s9, %s695_s10  }
  0x86   :  { %685 = dma.done.wait [#allocation7], 384  }
  0x87   :  { %686 = vsyncadd [#allocation7], 4294966912 }
  0x88   :  { %445 = vsyncpa [#allocation6], 1 }
  0x89   :  { %446 = vsyncpa [#allocation9], 1 }
  0x8a   :  { %447 = vsyncpa [#allocation7], 1 }

</bundles_post_ra>
